<compile_context>
chip_gen: v5e
topology: v5e:2x2
jax: 0.10.0
libtpu: 0.0.40
codegen_flags: <defaults>
</compile_context>

<pallas_src>
import jax
import jax.numpy as jnp
from jax.experimental import pallas as pl
from jax.experimental.pallas import tpu as pltpu

LANE = 128                       # lane width (last vreg dim)
BLOCK_BYTES = 4 * 1024 * 1024    # per-input HBM->VMEM block (~4 MiB)
SMALL_N_FALLBACK = 1 << 15       # below this, plain XLA is strictly faster
_VMEM_RAISE_THRESHOLD = 12 * 1024 * 1024   # v5e scoped default is 16 MiB


def _num_tensorcores() -> int:
    """2 independent TensorCores on v7x; 1 on v5e/v6e (safe default: 1)."""
    try:
        kind = jax.devices()[0].device_kind.lower()
    except Exception:
        return 1
    return 2 if "v7" in kind else 1


def _make_mae_kernel(tm, rows, steps_per_core, first_masked_step, any_masked):
    """Kernel with all static tiling info closed over."""

    def kernel(p_ref, t_ref, o_ref):
        c = pl.program_id(0)       # core-split axis (CORE_PARALLEL on v7x)
        i = pl.program_id(1)       # reduction axis ("arbitrary")

        @pl.when(i == 0)
        def _init():
            o_ref[...] = jnp.zeros_like(o_ref)

        # Cast-on-load keeps HBM traffic at the native dtype width.
        absd = jnp.abs(p_ref[...].astype(jnp.float32)
                       - t_ref[...].astype(jnp.float32))

        def fold(x):
            # (tm, 128) -> (8, 128): vreg-wise VPU adds only (no XLU, and a
            # single load+store of the resident accumulator per grid step).
            return jnp.sum(x.reshape(tm // 8, 8, LANE), axis=0)

        if any_masked:
            g = c * steps_per_core + i        # true (unclamped) global step

            # Only edge blocks (partial last block / duplicated clamped
            # blocks when steps don't divide across cores) pay the mask.
            @pl.when(g >= first_masked_step)
            def _edge():
                rid = jax.lax.broadcasted_iota(jnp.int32, (tm, LANE), 0)
                valid = (g * tm + rid) < rows
                o_ref[...] += fold(jnp.where(valid, absd, 0.0))

            @pl.when(g < first_masked_step)
            def _full():
                o_ref[...] += fold(absd)
        else:
            o_ref[...] += fold(absd)

    return kernel


def mae_pallas(preds, targets, *, allow_fallback=True):
    assert preds.shape == targets.shape, (preds.shape, targets.shape)
    n = int(preds.size)

    out_dtype = jnp.result_type(preds.dtype, targets.dtype)
    if not jnp.issubdtype(out_dtype, jnp.floating):
        out_dtype = jnp.float32

    p = preds.reshape(-1)
    t = targets.reshape(-1)
    rows = n // LANE

    # Tiny inputs (or anything that can't fill one (8, 128) row block):
    # launch/grid overhead dominates -> fused XLA reduction is faster.
    if (allow_fallback and n < SMALL_N_FALLBACK) or rows < 8:
        return jnp.mean(
            jnp.abs(p.astype(jnp.float32) - t.astype(jnp.float32))
        ).astype(out_dtype)

    # Lane tail (< 128 elements): summed with plain jnp and added to the
    # kernel partial sums -- no full-array jnp.pad copy.
    n_main = rows * LANE
    if n_main != n:
        tail = jnp.sum(jnp.abs(p[n_main:].astype(jnp.float32)
                               - t[n_main:].astype(jnp.float32)))
        p = p[:n_main]
        t = t[:n_main]
    else:
        tail = jnp.float32(0.0)

    p2 = p.reshape(rows, LANE)
    t2 = t.reshape(rows, LANE)

    # Row tile: byte-capped (so bf16/int8 don't shrink the block), rounded
    # down to the packed sublane quantum of the narrower input dtype.
    item_p = jnp.dtype(preds.dtype).itemsize
    item_t = jnp.dtype(targets.dtype).itemsize
    max_item = max(item_p, item_t)
    min_item = min(item_p, item_t)
    quant = min(32, 8 * max(1, 4 // max(1, min_item)))  # 8 f32/16 bf16/32 i8
    if rows < quant:
        quant = 8
    tm_cap = max(quant, (BLOCK_BYTES // (LANE * max_item)) // quant * quant)
    tm = max(8, min(tm_cap, (rows // quant) * quant))

    ncores = _num_tensorcores()
    total_steps = (rows + tm - 1) // tm
    steps_per_core = (total_steps + ncores - 1) // ncores
    last_block = total_steps - 1
    first_masked_step = total_steps - 1 if rows % tm else total_steps
    any_masked = ncores * steps_per_core > first_masked_step

    def in_map(c, i):
        # Clamp so every DMA stays in bounds; clamped/duplicated blocks are
        # fully masked inside the kernel.
        return (jnp.minimum(c * steps_per_core + i, last_block), 0)

    if ncores > 1:
        dims = (getattr(pltpu, "CORE_PARALLEL", "parallel"),
                getattr(pltpu, "ARBITRARY", "arbitrary"))
    else:
        dims = (getattr(pltpu, "ARBITRARY", "arbitrary"),
                getattr(pltpu, "ARBITRARY", "arbitrary"))

    # 2 inputs x 2 pipeline buffers x block: only raise the scoped-VMEM limit
    # when v5e's 16 MiB default would be too small (v6e/v7x default = 32 MiB).
    compiler_kwargs = dict(dimension_semantics=dims)
    vmem_needed = 2 * 2 * tm * LANE * max_item
    if vmem_needed > _VMEM_RAISE_THRESHOLD:
        compiler_kwargs["vmem_limit_bytes"] = 32 * 1024 * 1024

    acc = pl.pallas_call(
        _make_mae_kernel(tm, rows, steps_per_core, first_masked_step,
                         any_masked),
        out_shape=jax.ShapeDtypeStruct((ncores, 8, LANE), jnp.float32),
        grid_spec=pltpu.PrefetchScalarGridSpec(
            num_scalar_prefetch=0,
            grid=(ncores, steps_per_core),
            in_specs=[
                pl.BlockSpec((tm, LANE), in_map),
                pl.BlockSpec((tm, LANE), in_map),
            ],
            # One resident (8, 128) f32 accumulator block per core.
            out_specs=pl.BlockSpec((None, 8, LANE), lambda c, i: (c, 0, 0)),
        ),
        compiler_params=pltpu.CompilerParams(**compiler_kwargs),
    )(p2, t2)

    # Tiny epilogue: reduce the per-core (8, 128) partials, add the lane tail,
    # fold in 1/N once.
    return ((jnp.sum(acc) + tail) / n).astype(out_dtype)


if __name__ == "__main__":
    key = jax.random.PRNGKey(0)
    k1, k2, k3, k4, k5, k6 = jax.random.split(key, 6)

    def ref_mae(a, b):
        return jnp.mean(jnp.abs(a.astype(jnp.float32) - b.astype(jnp.float32)))

    # 1) Aligned f32 (2, 4, 16, 16): force the Pallas path.
    preds = jax.random.normal(k1, (2, 4, 16, 16), dtype=jnp.float32)
    targets = jax.random.normal(k2, (2, 4, 16, 16), dtype=jnp.float32)
    out1 = mae_pallas(preds, targets, allow_fallback=False)
    jax.block_until_ready(out1)
    assert jnp.allclose(out1, ref_mae(preds, targets), rtol=1e-5, atol=1e-6), (
        out1, ref_mae(preds, targets))

    # 2) Lane-unaligned f32 (5, 7, 40): exercises the wrapper lane-tail path,
    #    a multi-step grid and the gated in-kernel partial-block row mask.
    p_odd = jax.random.normal(k3, (5, 7, 40), dtype=jnp.float32)
    t_odd = jax.random.normal(k4, (5, 7, 40), dtype=jnp.float32)
    out2 = mae_pallas(p_odd, t_odd, allow_fallback=False)
    jax.block_until_ready(out2)
    assert jnp.allclose(out2, ref_mae(p_odd, t_odd), rtol=1e-5, atol=1e-6), (
        out2, ref_mae(p_odd, t_odd))

    # 3) bf16 inputs (4, 8, 64): cast-on-load, native (16, 128) bf16 tile.
    p_bf = jax.random.normal(k5, (4, 8, 64), dtype=jnp.bfloat16)
    t_bf = jax.random.normal(k6, (4, 8, 64), dtype=jnp.bfloat16)
    out3 = mae_pallas(p_bf, t_bf, allow_fallback=False)
    jax.block_until_ready(out3)
    assert jnp.allclose(out3.astype(jnp.float32), ref_mae(p_bf, t_bf),
                        rtol=1e-2, atol=1e-3), (out3, ref_mae(p_bf, t_bf))

    # 4) Default small-input fast path (no kernel launch).
    out4 = mae_pallas(preds, targets)
    jax.block_until_ready(out4)
    assert jnp.allclose(out4, ref_mae(preds, targets), rtol=1e-5, atol=1e-6), (
        out4, ref_mae(preds, targets))

    print("KERNEL_OK")
</pallas_src>

<mosaic_0001>
module attributes {stable_mosaic.version = 11 : i64} {
  func.func @kernel(%arg0: i32, %arg1: i32, %arg2: memref<16x128xf32, #tpu.memory_space<vmem>>, %arg3: memref<16x128xf32, #tpu.memory_space<vmem>>, %arg4: memref<1x8x128xf32, #tpu.memory_space<vmem>>) attributes {dimension_semantics = [#tpu.dimension_semantics<arbitrary>, #tpu.dimension_semantics<arbitrary>], iteration_bounds = array<i64: 1, 1>, scalar_prefetch = 0 : i64, scratch_operands = 0 : i64, tpu.core_type = #tpu.core_type<tc>, window_params = [{transform_indices = @transform_0, window_bounds = array<i64: 16, 128>}, {transform_indices = @transform_1, window_bounds = array<i64: 16, 128>}, {transform_indices = @transform_2, window_bounds = array<i64: 1, 8, 128>}]} {
    %c0_i32 = arith.constant 0 : i32
    %0 = arith.cmpi eq, %arg1, %c0_i32 : i32
    %1 = arith.extui %0 : i1 to i32
    %c0_i32_0 = arith.constant 0 : i32
    %2 = arith.cmpi ne, %1, %c0_i32_0 : i32
    scf.if %2 {
      %cst_10 = arith.constant 0.000000e+00 : f32
      %15 = vector.broadcast %cst_10 : f32 to vector<8x128xf32>
      %c0_11 = arith.constant 0 : index
      %c0_12 = arith.constant 0 : index
      %c0_13 = arith.constant 0 : index
      %16 = vector.load %arg4[%c0_11, %c0_12, %c0_13] : memref<1x8x128xf32, #tpu.memory_space<vmem>>, vector<1x8x128xf32>
      %17 = vector.shape_cast %16 : vector<1x8x128xf32> to vector<8x128xf32>
      %18 = vector.shape_cast %15 : vector<8x128xf32> to vector<1x8x128xf32>
      tpu.vector_store %arg4[%c0_11, %c0_12, %c0_13], %18 {strides = array<i32>} : memref<1x8x128xf32, #tpu.memory_space<vmem>>, vector<1x8x128xf32>,
    } else {
    }
    %c0 = arith.constant 0 : index
    %c0_1 = arith.constant 0 : index
    %3 = vector.load %arg2[%c0, %c0_1] : memref<16x128xf32, #tpu.memory_space<vmem>>, vector<16x128xf32>
    %c0_2 = arith.constant 0 : index
    %c0_3 = arith.constant 0 : index
    %4 = vector.load %arg3[%c0_2, %c0_3] : memref<16x128xf32, #tpu.memory_space<vmem>>, vector<16x128xf32>
    %5 = arith.subf %3, %4 : vector<16x128xf32>
    %6 = math.absf %5 : vector<16x128xf32>
    %c0_4 = arith.constant 0 : index
    %c0_5 = arith.constant 0 : index
    %c0_6 = arith.constant 0 : index
    %7 = vector.load %arg4[%c0_4, %c0_5, %c0_6] : memref<1x8x128xf32, #tpu.memory_space<vmem>>, vector<1x8x128xf32>
    %8 = vector.shape_cast %7 : vector<1x8x128xf32> to vector<8x128xf32>
    %9 = vector.shape_cast %6 : vector<16x128xf32> to vector<2x8x128xf32>
    %cst = arith.constant dense<0.000000e+00> : vector<8x128xf32>
    %10 = vector.multi_reduction <add>, %9, %cst [0] : vector<2x8x128xf32> to vector<8x128xf32>
    %11 = arith.addf %8, %10 : vector<8x128xf32>
    %c0_7 = arith.constant 0 : index
    %c0_8 = arith.constant 0 : index
    %c0_9 = arith.constant 0 : index
    %12 = vector.load %arg4[%c0_7, %c0_8, %c0_9] : memref<1x8x128xf32, #tpu.memory_space<vmem>>, vector<1x8x128xf32>
    %13 = vector.shape_cast %12 : vector<1x8x128xf32> to vector<8x128xf32>
    %14 = vector.shape_cast %11 : vector<8x128xf32> to vector<1x8x128xf32>
    tpu.vector_store %arg4[%c0_7, %c0_8, %c0_9], %14 {strides = array<i32>} : memref<1x8x128xf32, #tpu.memory_space<vmem>>, vector<1x8x128xf32>,
    return
  }
  func.func @transform_0(%arg0: i32, %arg1: i32) -> (i32, i32) {
    %c1_i32 = arith.constant 1 : i32
    %0 = arith.muli %arg0, %c1_i32 : i32
    %1 = arith.addi %0, %arg1 : i32
    %c0_i32 = arith.constant 0 : i32
    %2 = arith.minsi %1, %c0_i32 : i32
    %c0_i32_0 = arith.constant 0 : i32
    %c0_i32_1 = arith.constant 0 : i32
    return %2, %c0_i32_0 : i32, i32
  }
  func.func @transform_1(%arg0: i32, %arg1: i32) -> (i32, i32) {
    %c1_i32 = arith.constant 1 : i32
    %0 = arith.muli %arg0, %c1_i32 : i32
    %1 = arith.addi %0, %arg1 : i32
    %c0_i32 = arith.constant 0 : i32
    %2 = arith.minsi %1, %c0_i32 : i32
    %c0_i32_0 = arith.constant 0 : i32
    %c0_i32_1 = arith.constant 0 : i32
    return %2, %c0_i32_0 : i32, i32
  }
  func.func @transform_2(%arg0: i32, %arg1: i32) -> (i32, i32, i32) {
    %c0_i32 = arith.constant 0 : i32
    %c0_i32_0 = arith.constant 0 : i32
    %c0_i32_1 = arith.constant 0 : i32
    return %arg0, %c0_i32, %c0_i32_0 : i32, i32, i32
  }
}

</mosaic_0001>

<bundles_post_ra>
// kernel: tpu_custom_call.1
= control target key start
LH: loop header
LB: loop body
LE: loop exit
PB: predicated region body
PF: predicated region fallthrough
CT: control target
= control target key end

     0   :  { %7 = vsyncpa [#allocation3], 0  ;;  %s216_s0 = inlined_call_operand.hbm [shape: f32[16,128], index: 0, kind: input, shape index: {}]   ;;  %s217_s1 = inlined_call_operand.hbm [shape: f32[16,128], index: 1, kind: input, shape index: {}]   ;;  %s218_s2 = inlined_call_operand.hbm [shape: f32[1,8,128], index: 2, kind: output, shape index: {}]  }
   0x1   :  { %8 = vsyncpa [#allocation6], 0 }
   0x2   :  { %9 = vsyncpa [#allocation4], 0  ;;  %s20_s11 = sshll.u32 %s216_s0, 4  ;;  %s187_s12 = smov [#allocation2]   ;;  %s21_s11 = int_to_ptr.hbm [resolvable:$true] %s20_s11 }
   0x3   :  { %s22_s13 = sshll.u32 %s187_s12, 4  ;;  %s39_s16 = sshll.u32 %s217_s1, 4  ;;  %s23_s13 = int_to_ptr.vmem [resolvable:$true] %s22_s13  ;;  %s40_s16 = int_to_ptr.hbm [resolvable:$true] %s39_s16 }
   0x4   :  { %s188_s17 = smov 128   ;;  %s189_s18 = smov 8  }
   0x5   :  { %28 = dma.hbm_to_vmem [thread:$0]  %s21_s11, 256, %s23_s13, [#allocation3], %s188_s17, %s188_s17, %s189_s18  }
   0x6   :  { %s190_s19 = smov [#allocation5]  }
   0x7   :  { %s41_s20 = sshll.u32 %s190_s19, 4  ;;  %s42_s20 = int_to_ptr.vmem [resolvable:$true] %s41_s20 }
   0x8   :  { %47 = dma.hbm_to_vmem [thread:$0]  %s40_s16, 256, %s42_s20, [#allocation6], %s188_s17, %s188_s17, %s189_s18  }
   0x9   :  { %181 = dma.done.wait [#allocation3], 256  }
   0xa   :  { %182 = vsyncadd [#allocation3], 4294967040 }
   0xb   :  { %183 = dma.done.wait [#allocation6], 256  }
   0xc   :  { %184 = vsyncadd [#allocation6], 4294967040  ;;  %v69_v0 = vld [vmem:[#allocation2] sm:$0xff]  ;;  %v70_v1 = vld [vmem:[#allocation2 + $0x8] sm:$0xff]  ;;  %s191_s0 = smov [#allocation7]   ;;  %s88_s23 = sshll.u32 %s218_s2, 4  ;;  %s89_s23 = int_to_ptr.hbm [resolvable:$true] %s88_s23 }
   0xd   :  { %v71_v2 = vld [vmem:[#allocation5] sm:$0xff]  ;;  %v72_v3 = vld [vmem:[#allocation5 + $0x8] sm:$0xff]  ;;  %s86_s1 = sshll.u32 %s191_s0, 4  ;;  %s87_s1 = int_to_ptr.vmem [resolvable:$true] %s86_s1 }
   0xe   :  { %v73_v4 = vsub.f32 %v69_v0, %v71_v2  ;;  %v74_v5 = vsub.f32 %v70_v1, %v72_v3 }
  0x10   :  { %v75_v6 = vand.u32 2147483647, %v73_v4  ;;  %v76_v7 = vand.u32 2147483647, %v74_v5 }
  0x12   :  { %v78_v8 = vadd.f32 %v76_v7, %v75_v6 }
  0x14   :  { %80 = vst [vmem:[#allocation7] sm:$0xff] %v78_v8 }
  0x15   :  { %91 = dma.vmem_to_hbm [thread:$0]  %s87_s1, 128, %s89_s23, [#allocation4]  }
  0x16   :  { %185 = dma.done.wait [#allocation4], 128  }
  0x17   :  { %186 = vsyncadd [#allocation4], 4294967168 }
  0x18   :  { %96 = vsyncpa [#allocation3], 1 }
  0x19   :  { %97 = vsyncpa [#allocation6], 1 }
  0x1a   :  { %98 = vsyncpa [#allocation4], 1 }

</bundles_post_ra>
